<compile_context>
chip_gen: v7x
topology: tpu7x:2x2x1
jax: 0.10.0
libtpu: 0.0.40
codegen_flags: <defaults>
</compile_context>

<pallas_src>
import jax
import jax.numpy as jnp
from jax.experimental import pallas as pl
from jax.experimental.pallas import tpu as pltpu


def _conv_as_matmul_kernel(xt_ref, wt_ref, b_ref, o_ref):
    # xt_ref: (K, M_tile)      im2col'ed input slab, K = 9*Cin, lane-dense M.
    # wt_ref: (Cout, K)        conv weights, (tap, cin) flattened into K.
    # b_ref:  (Cout, 1)        bias column (broadcast along lanes).
    # o_ref:  (Cout, M_tile)   output slab, lane-dense (M_tile % 128 == 0).
    acc = jnp.dot(wt_ref[...], xt_ref[...],
                  preferred_element_type=jnp.float32)       # single MXU matmul
    acc = jnp.maximum(acc + b_ref[...], 0.0)                 # bias + ReLU fused
    o_ref[...] = acc.astype(o_ref.dtype)


def _pick_batch_tile(nb, hw):
    # Prefer a few images per grid step while keeping >=2 steps (megacore /
    # dual TensorCore) and a lane-aligned M tile (multiple of 128).
    for bt in (8, 4, 2, 1):
        if nb % bt != 0:
            continue
        if (bt * hw) % 128 != 0:
            continue
        if nb // bt >= 2:
            return bt
    return nb  # single full-extent block fallback (always legal)


def embedding_net(x_nchw, weight, bias, compute_dtype=jnp.float32):
    """Conv2d(Cin, Cout, 3, padding=1) + ReLU shared-weight embedding.

    x_nchw: (N, Cin, H, W) float32 (PyTorch layout)
    weight: (3, 3, Cin, Cout) float32
    bias:   (Cout,) float32
    returns (N, Cout, H, W) float32 (PyTorch layout)

    compute_dtype: set to jnp.bfloat16 on v5e/v6e to halve input/weight DMA
    bytes (accumulation stays f32 via preferred_element_type).
    """
    NB, Cin, H, W = x_nchw.shape
    Cout = weight.shape[-1]
    K = 9 * Cin
    M_total = NB * H * W

    # ---- wrapper-side layout plumbing (im2col, transposed slabs) ----------
    # (NB, Cin, H, W) -> (Cin, NB, H, W), zero-pad spatial dims by 1.
    x_cnhw = jnp.transpose(x_nchw, (1, 0, 2, 3))
    x_pad = jnp.pad(x_cnhw, ((0, 0), (0, 0), (1, 1), (1, 1)))
    # 9 tap slices stacked along channel -> K rows in (dh, dw, cin) order,
    # then flatten (NB, H, W) into the lane-dense M axis.
    taps = [x_pad[:, :, dh:dh + H, dw:dw + W]
            for dh in range(3) for dw in range(3)]
    x_t = jnp.concatenate(taps, axis=0).reshape(K, M_total)

    # Weights (3,3,Cin,Cout) -> (Cout, K) with matching (dh, dw, cin) order.
    w_t = jnp.transpose(weight, (3, 0, 1, 2)).reshape(Cout, K)
    b_col = bias.reshape(Cout, 1).astype(jnp.float32)

    x_t = x_t.astype(compute_dtype)
    w_t = w_t.astype(compute_dtype)

    bt = _pick_batch_tile(NB, H * W)
    m_tile = bt * H * W
    grid = (M_total // m_tile,)

    out_t = pl.pallas_call(
        _conv_as_matmul_kernel,
        out_shape=jax.ShapeDtypeStruct((Cout, M_total), jnp.float32),
        grid_spec=pltpu.PrefetchScalarGridSpec(
            num_scalar_prefetch=0,
            grid=grid,
            in_specs=[
                pl.BlockSpec((K, m_tile), lambda n: (0, n)),
                pl.BlockSpec((Cout, K), lambda n: (0, 0)),
                pl.BlockSpec((Cout, 1), lambda n: (0, 0)),
            ],
            out_specs=pl.BlockSpec((Cout, m_tile), lambda n: (0, n)),
        ),
        compiler_params=pltpu.CompilerParams(
            dimension_semantics=("parallel",)),
    )(x_t, w_t, b_col)

    # (Cout, NB*H*W) -> (NB, Cout, H, W)
    out = out_t.reshape(Cout, NB, H, W)
    return jnp.transpose(out, (1, 0, 2, 3))


def gnnet_forward(input1, input2, weight, bias):
    """GNNet.forward: shared embedding net on both inputs, fused in one call."""
    n = input1.shape[0]
    fused = jnp.concatenate([input1, input2], axis=0)      # (2N, Cin, H, W)
    out = embedding_net(fused, weight, bias)
    return out[:n], out[n:]


def gnnet_get_embedding(x, weight, bias):
    """GNNet.get_embedding."""
    return embedding_net(x, weight, bias)


if __name__ == "__main__":
    # Small shapes consistent with an image-pair forward pass.
    N, Cin, H, W = 2, 4, 16, 16
    Cout = 32

    key = jax.random.PRNGKey(0)
    k1, k2, kw, kb = jax.random.split(key, 4)

    input1 = jax.random.normal(k1, (N, Cin, H, W), dtype=jnp.float32)
    input2 = jax.random.normal(k2, (N, Cin, H, W), dtype=jnp.float32)

    # Deterministic synthetic parameters for the embedding net
    # (Conv2d(Cin, Cout, 3, padding=1) weight + bias).
    weight = 0.1 * jax.random.normal(kw, (3, 3, Cin, Cout), dtype=jnp.float32)
    bias = 0.01 * jax.random.normal(kb, (Cout,), dtype=jnp.float32)

    out1, out2 = jax.jit(gnnet_forward)(input1, input2, weight, bias)
    jax.block_until_ready((out1, out2))

    # Reference check against lax.conv (same semantics as F.conv2d pad=1) + ReLU.
    w_oihw = jnp.transpose(weight, (3, 2, 0, 1))  # (Cout, Cin, 3, 3)

    def _ref(x):
        return jax.nn.relu(
            jax.lax.conv_general_dilated(
                x, w_oihw, window_strides=(1, 1), padding=((1, 1), (1, 1)),
                dimension_numbers=("NCHW", "OIHW", "NCHW"))
            + bias[None, :, None, None])

    assert out1.shape == (N, Cout, H, W) and out2.shape == (N, Cout, H, W)
    assert jnp.allclose(out1, _ref(input1), atol=1e-4, rtol=1e-4)
    assert jnp.allclose(out2, _ref(input2), atol=1e-4, rtol=1e-4)

    print("KERNEL_OK")
</pallas_src>

<mosaic_0001>
module attributes {stable_mosaic.version = 11 : i64} {
  func.func @_conv_as_matmul_kernel(%arg0: i32, %arg1: memref<36x512xf32, #tpu.memory_space<vmem>>, %arg2: memref<32x36xf32, #tpu.memory_space<vmem>>, %arg3: memref<32x1xf32, #tpu.memory_space<vmem>>, %arg4: memref<32x512xf32, #tpu.memory_space<vmem>>) attributes {dimension_semantics = [#tpu.dimension_semantics<parallel>], iteration_bounds = array<i64: 2>, scalar_prefetch = 0 : i64, scratch_operands = 0 : i64, tpu.core_type = #tpu.core_type<tc>, window_params = [{transform_indices = @transform_0, window_bounds = array<i64: 36, 512>}, {pipeline_mode = #tpu.pipeline_mode<synchronous>, transform_indices = @transform_1, window_bounds = array<i64: 32, 36>}, {pipeline_mode = #tpu.pipeline_mode<synchronous>, transform_indices = @transform_2, window_bounds = array<i64: 32, 1>}, {transform_indices = @transform_3, window_bounds = array<i64: 32, 512>}]} {
    %c0 = arith.constant 0 : index
    %c0_0 = arith.constant 0 : index
    %0 = vector.load %arg2[%c0, %c0_0] : memref<32x36xf32, #tpu.memory_space<vmem>>, vector<32x36xf32>
    %c0_1 = arith.constant 0 : index
    %c0_2 = arith.constant 0 : index
    %1 = vector.load %arg1[%c0_1, %c0_2] : memref<36x512xf32, #tpu.memory_space<vmem>>, vector<36x512xf32>
    %cst = arith.constant dense<0.000000e+00> : vector<32x512xf32>
    %2 = tpu.matmul %0, %1, %cst {dimension_numbers = #tpu.dot_dimension_numbers<[1], [0], [0], [1], [0, 0, 1, 1], [], []>} : vector<32x36xf32>, vector<36x512xf32>, vector<32x512xf32> -> vector<32x512xf32>
    %c0_3 = arith.constant 0 : index
    %c0_4 = arith.constant 0 : index
    %3 = vector.load %arg3[%c0_3, %c0_4] : memref<32x1xf32, #tpu.memory_space<vmem>>, vector<32x1xf32>
    %4 = vector.broadcast %3 : vector<32x1xf32> to vector<32x512xf32>
    %5 = arith.addf %2, %4 : vector<32x512xf32>
    %cst_5 = arith.constant 0.000000e+00 : f32
    %6 = vector.broadcast %cst_5 : f32 to vector<32x512xf32>
    %7 = arith.maximumf %5, %6 : vector<32x512xf32>
    %c0_6 = arith.constant 0 : index
    %c0_7 = arith.constant 0 : index
    %8 = vector.load %arg4[%c0_6, %c0_7] : memref<32x512xf32, #tpu.memory_space<vmem>>, vector<32x512xf32>
    tpu.vector_store %arg4[%c0_6, %c0_7], %7 {strides = array<i32>} : memref<32x512xf32, #tpu.memory_space<vmem>>, vector<32x512xf32>,
    return
  }
  func.func @transform_0(%arg0: i32) -> (i32, i32) {
    %c0_i32 = arith.constant 0 : i32
    %c0_i32_0 = arith.constant 0 : i32
    return %c0_i32, %arg0 : i32, i32
  }
  func.func @transform_1(%arg0: i32) -> (i32, i32) {
    %c0_i32 = arith.constant 0 : i32
    %c0_i32_0 = arith.constant 0 : i32
    %c0_i32_1 = arith.constant 0 : i32
    return %c0_i32, %c0_i32_0 : i32, i32
  }
  func.func @transform_2(%arg0: i32) -> (i32, i32) {
    %c0_i32 = arith.constant 0 : i32
    %c0_i32_0 = arith.constant 0 : i32
    %c0_i32_1 = arith.constant 0 : i32
    return %c0_i32, %c0_i32_0 : i32, i32
  }
  func.func @transform_3(%arg0: i32) -> (i32, i32) {
    %c0_i32 = arith.constant 0 : i32
    %c0_i32_0 = arith.constant 0 : i32
    return %c0_i32, %arg0 : i32, i32
  }
}

</mosaic_0001>

<bundles_post_ra>
// kernel: gnnet_forward.1
= control target key start
LH: loop header
LB: loop body
LE: loop exit
PB: predicated region body
PF: predicated region fallthrough
CT: control target
= control target key end

     0   :  { %s741_s12 = smov 0   ;;  %s743_s13 = smov 0   ;;  %s945_s0 = inlined_call_operand.vmem [shape: f32[36,1024], index: 0, kind: input, shape index: {}]   ;;  %s946_s1 = inlined_call_operand.vmem [shape: f32[32,36], index: 1, kind: input, shape index: {}]   ;;  %s947_s2 = inlined_call_operand.vmem [shape: f32[32,1], index: 2, kind: input, shape index: {}]   ;;  %s948_s3 = inlined_call_operand.vmem [shape: f32[32,1024], index: 3, kind: output, shape index: {}]  }
   0x1   :  { %s745_s14 = smov 0  }
   0x2 LB: > { %s622_s15 = sadd.s32 4294967295, %s717_s14   ;;  %s758_s16 = sadd.s32 1, %s717_s14   ;;  %s717_s14 = sphi %s745_s14, %s952_s14   ;;  %s713_s13 = sphi %s743_s13, %s951_s13   ;;  %s709_s12 = sphi %s741_s12, %s950_s12  }
   0x3   : > { %s17_s17 = ssub.s32 %s717_s14, %s758_s16  ;;  %s20_s18 = sadd.s32 1, %s713_s13 }
   0x4   : > { %p18_p0 = scmp.eq.s32.totalorder %s17_s17, 0  ;;  %p27_p1 = scmp.ne.s32.totalorder %s713_s13, %s709_s12 }
   0x5   : > { %p28_p2 = scmp.eq.s32.totalorder %s717_s14, 0  ;;  %p99_p3 = scmp.eq.s32.totalorder %s622_s15, 1 }
   0x6   : > { %s769_s19 = scalar_select %p18_p0, %s713_s13, %s20_s18  }
   0x7   : > { %p29_p4 = por %p28_p2, %p27_p1  ;;  %p771_p5 = por %p99_p3, %p27_p1 }
   0x8   : > { %p625_p6 = scmp.ge.s32.totalorder %s717_s14, 2 }
   0xa   : > { %127 = sbr.rel (%p625_p6) target bundleno = 32 (0x20), region = 24 }
  0x11   : > { %130 = sbr.rel (!%p29_p4) target bundleno = 32 (0x20), region = 28  ;;  %s132_s21 = sand.u32 (%p29_p4), 1, %s713_s13  }
  0x12   : > { %s647_s22 = sshll.u32 (%p29_p4), %s717_s14, 5  ;;  %s665_s23 = smul.u32 (%p29_p4), 160, %s132_s21 }
  0x13   : > { %s781_s26 = scalar_lea.vmem (%p29_p4), %s945_s0, %s647_s22 }
  0x14   : > { %v150_v0 = vld [vmem:[%s781_s26] sm:$0xff] (%p29_p4)  ;;  %v152_v1 = vld [vmem:[%s781_s26 + $0x8] sm:$0xff] (%p29_p4)  ;;  %v154_v2 = vld [vmem:[%s781_s26 + $0x10] sm:$0xff] (%p29_p4)  ;;  %s789_s27 = scalar_lea.vmem (%p29_p4), [#allocation2], %s665_s23 }
  0x15   : > { %v156_v3 = vld [vmem:[%s781_s26 + $0x18] sm:$0xff] (%p29_p4)  ;;  %v158_v4 = vld [vmem:[%s781_s26 + $0x40] sm:$0xff] (%p29_p4)  ;;  %v160_v5 = vld [vmem:[%s781_s26 + $0x48] sm:$0xff] (%p29_p4)  ;;  %151 = vst [vmem:[%s789_s27] sm:$0xff] (%p29_p4), %v150_v0 }
  0x16   : > { %153 = vst [vmem:[%s789_s27 + $0x8] sm:$0xff] (%p29_p4), %v152_v1  ;;  %155 = vst [vmem:[%s789_s27 + $0x10] sm:$0xff] (%p29_p4), %v154_v2  ;;  %v162_v6 = vld [vmem:[%s781_s26 + $0x50] sm:$0xff] (%p29_p4)  ;;  %v164_v7 = vld [vmem:[%s781_s26 + $0x58] sm:$0xff] (%p29_p4) }
  0x17   : > { %157 = vst [vmem:[%s789_s27 + $0x18] sm:$0xff] (%p29_p4), %v156_v3  ;;  %159 = vst [vmem:[%s789_s27 + $0x20] sm:$0xff] (%p29_p4), %v158_v4  ;;  %v166_v8 = vld [vmem:[%s781_s26 + $0x80] sm:$0xff] (%p29_p4)  ;;  %v168_v9 = vld [vmem:[%s781_s26 + $0x88] sm:$0xff] (%p29_p4) }
  0x18   : > { %161 = vst [vmem:[%s789_s27 + $0x28] sm:$0xff] %v160_v5  ;;  %163 = vst [vmem:[%s789_s27 + $0x30] sm:$0xff] %v162_v6  ;;  %v170_v10 = vld [vmem:[%s781_s26 + $0x90] sm:$0xff]  ;;  %v172_v11 = vld [vmem:[%s781_s26 + $0x98] sm:$0xff] }
  0x19   : > { %165 = vst [vmem:[%s789_s27 + $0x38] sm:$0xff] %v164_v7  ;;  %167 = vst [vmem:[%s789_s27 + $0x40] sm:$0xff] %v166_v8  ;;  %v174_v12 = vld [vmem:[%s781_s26 + $0xc0] sm:$0xff]  ;;  %v176_v13 = vld [vmem:[%s781_s26 + $0xc8] sm:$0xff] }
  0x1a   : > { %169 = vst [vmem:[%s789_s27 + $0x48] sm:$0xff] %v168_v9  ;;  %171 = vst [vmem:[%s789_s27 + $0x50] sm:$0xff] %v170_v10  ;;  %v178_v14 = vld [vmem:[%s781_s26 + $0xd0] sm:$0xff]  ;;  %v180_v15 = vld [vmem:[%s781_s26 + $0xd8] sm:$0xff] }
  0x1b   : > { %173 = vst [vmem:[%s789_s27 + $0x58] sm:$0xff] %v172_v11  ;;  %175 = vst [vmem:[%s789_s27 + $0x60] sm:$0xff] %v174_v12  ;;  %v182_v16 = vld [vmem:[%s781_s26 + $0x100] sm:$0xff]  ;;  %v184_v17 = vld [vmem:[%s781_s26 + $0x108] sm:$0xff] }
  0x1c   : > { %177 = vst [vmem:[%s789_s27 + $0x68] sm:$0xff] %v176_v13  ;;  %179 = vst [vmem:[%s789_s27 + $0x70] sm:$0xff] %v178_v14  ;;  %v186_v18 = vld [vmem:[%s781_s26 + $0x110] sm:$0xff]  ;;  %v188_v19 = vld [vmem:[%s781_s26 + $0x118] sm:$0xff] }
  0x1d   : > { %181 = vst [vmem:[%s789_s27 + $0x78] sm:$0xff] %v180_v15  ;;  %183 = vst [vmem:[%s789_s27 + $0x80] sm:$0xff] %v182_v16 }
  0x1e   : > { %185 = vst [vmem:[%s789_s27 + $0x88] sm:$0xff] %v184_v17  ;;  %187 = vst [vmem:[%s789_s27 + $0x90] sm:$0xff] %v186_v18 }
  0x1f   : > { %189 = vst [vmem:[%s789_s27 + $0x98] sm:$0xff] %v188_v19 }
  0x20 PF: > { %p628_p7 = scmp.ge.s32.totalorder %s717_s14, 1  ;;  %p194_p8 = scmp.lt.s32.totalorder %s717_s14, 3 }
  0x22   : > { %p195_p9 = pnand %p628_p7, %p194_p8 }
  0x23   : > { %s201_s28 = sand.u32 (!%p195_p9), 1, %s709_s12   ;;  %v719_v20 = vmov (!%p195_p9), 0.0   ;;  %v249_v21 = vld [vmem:[%s947_s2] sm:$0xff] (!%p195_p9)  ;;  %v720_v22 = vmov (!%p195_p9), 0   ;;  %v251_v23 = vld [vmem:[%s947_s2 + $0x10] sm:$0xff] (!%p195_p9)  ;;  %v250_v24 = vld [vmem:[%s947_s2 + $0x8] sm:$0xff] (!%p195_p9) }
  0x24   : > { %198 = sbr.rel (%p195_p9) target bundleno = 293 (0x125), region = 51  ;;  %363 = vmatprep.mubr.f32.mxu0 (!%p195_p9), %v719_v20  ;;  %452 = vmatprep.mubr.f32.mxu1 (!%p195_p9), %v719_v20  ;;  %v252_v28 = vld [vmem:[%s947_s2 + $0x18] sm:$0xff] (!%p195_p9)  ;;  %vm286_vm0 = vcmask (!%p195_p9), 1043456   ;;  %v225_v54 = vld [vmem:[%s946_s1] sm:$0xff] (!%p195_p9)  ;;  %vm273_vm1 = vcmask (!%p195_p9), 293888   ;;  %v226_v55 = vld [vmem:[%s946_s1 + $0x8] sm:$0xff] (!%p195_p9) }
  0x25   : > { %s666_s29 = smul.u32 (!%p195_p9), 160, %s201_s28  ;;  %693 = vset.pattern.permute.xlu0 (!%p195_p9), %v720_v22  ;;  %694 = vset.pattern.permute.xlu1 (!%p195_p9), %v720_v22  ;;  %v227_v56 = vld [vmem:[%s946_s1 + $0x10] sm:$0xff] (!%p195_p9)  ;;  %v228_v57 = vld [vmem:[%s946_s1 + $0x18] sm:$0xff] (!%p195_p9)  ;;  %s629_s27 = sshll.u32 (!%p195_p9), %s201_s28, 7 }
  0x26   : > { %255 = vperm.xlu0 (!%p195_p9), %693, %v249_v21   ;;  %265 = vperm.xlu1 (!%p195_p9), %694, %v251_v23  }
  0x27   : > { %s841_s9 = scalar_lea.vmem (!%p195_p9), [#allocation2], %s666_s29  ;;  %s894_s29 = scalar_lea.vmem (!%p195_p9), [#allocation3], %s629_s27 }
  0x28   : > { %v230_v25 = vld [vmem:[%s841_s9 + $0x8] sm:$0xff] (!%p195_p9)  ;;  %v232_v27 = vld [vmem:[%s841_s9 + $0x18] sm:$0xff] (!%p195_p9)  ;;  %v229_v31 = vld [vmem:[%s841_s9] sm:$0xff] (!%p195_p9) }
  0x29   : > { %v234_v26 = vld [vmem:[%s841_s9 + $0x28] sm:$0xff] (!%p195_p9)  ;;  %v236_v30 = vld [vmem:[%s841_s9 + $0x38] sm:$0xff] (!%p195_p9)  ;;  %v233_v32 = vld [vmem:[%s841_s9 + $0x20] sm:$0xff] (!%p195_p9) }
  0x2a   : > { %v649_v29 = vpack.c.bf16 (!%p195_p9), %v234_v26, %v230_v25  ;;  %v657_v33 = vpack.c.bf16 (!%p195_p9), %v236_v30, %v232_v27  ;;  %v651_v34 = vpack.c.bf16 (!%p195_p9), %v233_v32, %v229_v31  ;;  %v231_v35 = vld [vmem:[%s841_s9 + $0x10] sm:$0xff] (!%p195_p9)  ;;  %v238_v37 = vld [vmem:[%s841_s9 + $0x48] sm:$0xff] (!%p195_p9)  ;;  %v240_v40 = vld [vmem:[%s841_s9 + $0x58] sm:$0xff] (!%p195_p9)  ;;  %260 = vperm.xlu0 (!%p195_p9), %693, %v250_v24   ;;  %270 = vperm.xlu1 (!%p195_p9), %694, %v252_v28  }
  0x2b   : > { %v235_v36 = vld [vmem:[%s841_s9 + $0x30] sm:$0xff]  ;;  %v242_v39 = vld [vmem:[%s841_s9 + $0x68] sm:$0xff]  ;;  %v244_v41 = vld [vmem:[%s841_s9 + $0x78] sm:$0xff]  ;;  %s648_s12 = sshll.u32 (%p771_p5), %s622_s15, 5 }
  0x2c   : > { %650 = vmatprep.subr.bf16.mxu0 %v649_v29  ;;  %v659_v38 = vpack.c.bf16 %v235_v36, %v231_v35  ;;  %658 = vmatprep.subr.bf16.mxu1 %v657_v33  ;;  %v653_v42 = vpack.c.bf16 %v242_v39, %v238_v37  ;;  %v661_v43 = vpack.c.bf16 %v244_v41, %v240_v40  ;;  %v237_v44 = vld [vmem:[%s841_s9 + $0x40] sm:$0xff]  ;;  %v239_v46 = vld [vmem:[%s841_s9 + $0x50] sm:$0xff]  ;;  %v246_v50 = vld [vmem:[%s841_s9 + $0x88] sm:$0xf]  ;;  %s518_s20 = scalar_lea.vmem (%p771_p5), %s948_s3, %s648_s12 }
  0x2d   : > { %652 = vmatpush1.bf16.msra.mxu0 %v651_v34  ;;  %v241_v45 = vld [vmem:[%s841_s9 + $0x60] sm:$0xff]  ;;  %v243_v48 = vld [vmem:[%s841_s9 + $0x70] sm:$0xff]  ;;  %v248_v51 = vld [vmem:[%s841_s9 + $0x98] sm:$0xf] }
  0x2e   : > { %660 = vmatpush1.bf16.msra.mxu1 %v659_v38  ;;  %v655_v47 = vpack.c.bf16 %v241_v45, %v237_v44  ;;  %654 = vmatprep.subr.bf16.mxu0 %v653_v42  ;;  %v663_v49 = vpack.c.bf16 %v243_v48, %v239_v46  ;;  %v245_v52 = vld [vmem:[%s841_s9 + $0x80] sm:$0xf]  ;;  %v247_v53 = vld [vmem:[%s841_s9 + $0x90] sm:$0xf] }
  0x2f   : > { %662 = vmatprep.subr.bf16.mxu1 %v661_v43 }
  0x31   : > { %656 = vmatpush1.bf16.msra.mxu0 %v655_v47 }
  0x32   : > { %664 = vmatpush1.bf16.msra.mxu1 %v663_v49  ;;  %630 = vmatprep.subr.msk.mxu0 %vm286_vm0, %v246_v50 }
  0x33   : > { %636 = vmatprep.subr.msk.mxu1 %vm286_vm0, %v248_v51 }
  0x35   : > { %631 = vmatpush1.msk.msra.mxu0 %vm286_vm0, %v245_v52 }
  0x36   : > { %637 = vmatpush1.msk.msra.mxu1 %vm286_vm0, %v247_v53  ;;  %632 = vmatmul.mubr.msk.f32.vlgmr.msra.gmra.mrb[0].mxu0 %vm273_vm1, %v225_v54 }
  0x37   : > { %638 = vmatmul.mubr.msk.f32.vlgmr.msra.gmra.mrb[0].mxu1 %vm273_vm1, %v225_v54  ;;  %369 = vmatprep.mubr.f32.mxu0 %v719_v20 }
  0x38   : > { %458 = vmatprep.mubr.f32.mxu1 %v719_v20 }
  0x3a   : > { %633 = vmatmul.mubr.msk.f32.gmra.mrb[2].mxu0 %vm273_vm1, %v226_v55 }
  0x3b   : > { %639 = vmatmul.mubr.msk.f32.gmra.mrb[2].mxu1 %vm273_vm1, %v226_v55  ;;  %375 = vmatprep.mubr.f32.mxu0 %v719_v20 }
  0x3c   : > { %464 = vmatprep.mubr.f32.mxu1 %v719_v20 }
  0x3e   : > { %634 = vmatmul.mubr.msk.f32.gmra.mrb[4].mxu0 %vm273_vm1, %v227_v56 }
  0x3f   : > { %640 = vmatmul.mubr.msk.f32.gmra.mrb[4].mxu1 %vm273_vm1, %v227_v56  ;;  %381 = vmatprep.mubr.f32.mxu0 %v719_v20 }
  0x40   : > { %470 = vmatprep.mubr.f32.mxu1 %v719_v20 }
  0x42   : > { %635 = vmatmul.mubr.msk.f32.gmra.mrb[6].mxu0 %vm273_vm1, %v228_v57 }
  0x43   : > { %641 = vmatmul.mubr.msk.f32.gmra.mrb[6].mxu1 %vm273_vm1, %v228_v57 }
  0xa5   : > { %v256_v58 = vpop.permute.xlu0 %255  ;;  %v266_v13 = vpop.permute.xlu1 %265 }
  0xa9   : > { %v261_v2 = vpop.permute.xlu0 %260  ;;  %v271_v31 = vpop.permute.xlu1 %270 }
 0x109   : > { %v365_v59 = vpop.f32.mrb[0].mxu0 }
 0x10a   : > { %v366_v60 = vadd.f32 %v365_v59, %v256_v58  ;;  %v454_v61 = vpop.f32.mrb[0].mxu1  ;;  %v367_v62 = vpop.f32.mrb[1].mxu0 }
 0x10b   : > { %v455_v63 = vadd.f32 %v454_v61, %v256_v58  ;;  %v368_v0 = vadd.f32 %v367_v62, %v256_v58  ;;  %v456_v1 = vpop.f32.mrb[1].mxu1 }
 0x10c   : > { %v477_v3 = vmax.f32 %v366_v60, 0.0  ;;  %v457_v4 = vadd.f32 %v456_v1, %v256_v58 }
 0x10d   : > { %v479_v5 = vmax.f32 %v455_v63, 0.0  ;;  %v478_v6 = vmax.f32 %v368_v0, 0.0  ;;  %v371_v7 = vpop.f32.mrb[2].mxu0 }
 0x10e   : > { %493 = vst [vmem:[%s894_s29] sm:$0xff] %v477_v3  ;;  %v480_v8 = vmax.f32 %v457_v4, 0.0  ;;  %v372_v9 = vadd.f32 %v371_v7, %v261_v2  ;;  %v460_v10 = vpop.f32.mrb[2].mxu1  ;;  %v373_v11 = vpop.f32.mrb[3].mxu0 }
 0x10f   : > { %495 = vst [vmem:[%s894_s29 + $0x10] sm:$0xff] %v479_v5  ;;  %494 = vst [vmem:[%s894_s29 + $0x8] sm:$0xff] %v478_v6  ;;  %v461_v12 = vadd.f32 %v460_v10, %v261_v2  ;;  %v374_v14 = vadd.f32 %v373_v11, %v261_v2  ;;  %v462_v15 = vpop.f32.mrb[3].mxu1 }
 0x110   : > { %496 = vst [vmem:[%s894_s29 + $0x18] sm:$0xff] %v480_v8  ;;  %v481_v16 = vmax.f32 %v372_v9, 0.0  ;;  %v463_v17 = vadd.f32 %v462_v15, %v261_v2 }
 0x111   : > { %v483_v18 = vmax.f32 %v461_v12, 0.0  ;;  %v482_v19 = vmax.f32 %v374_v14, 0.0  ;;  %v377_v20 = vpop.f32.mrb[4].mxu0 }
 0x112   : > { %497 = vst [vmem:[%s894_s29 + $0x20] sm:$0xff] %v481_v16  ;;  %v484_v21 = vmax.f32 %v463_v17, 0.0  ;;  %v378_v22 = vadd.f32 %v377_v20, %v266_v13  ;;  %v466_v23 = vpop.f32.mrb[4].mxu1  ;;  %v379_v24 = vpop.f32.mrb[5].mxu0 }
 0x113   : > { %499 = vst [vmem:[%s894_s29 + $0x30] sm:$0xff] %v483_v18  ;;  %498 = vst [vmem:[%s894_s29 + $0x28] sm:$0xff] %v482_v19  ;;  %v467_v25 = vadd.f32 %v466_v23, %v266_v13  ;;  %v380_v26 = vadd.f32 %v379_v24, %v266_v13  ;;  %v468_v27 = vpop.f32.mrb[5].mxu1 }
 0x114   : > { %500 = vst [vmem:[%s894_s29 + $0x38] sm:$0xff] %v484_v21  ;;  %v485_v28 = vmax.f32 %v378_v22, 0.0  ;;  %v469_v29 = vadd.f32 %v468_v27, %v266_v13 }
 0x115   : > { %v487_v30 = vmax.f32 %v467_v25, 0.0  ;;  %v486_v32 = vmax.f32 %v380_v26, 0.0  ;;  %v383_v33 = vpop.f32.mrb[6].mxu0  ;;  %v531_v46 = vld [vmem:[%s894_s29] sm:$0xff] (%p771_p5) }
 0x116   : > { %501 = vst [vmem:[%s894_s29 + $0x40] sm:$0xff] %v485_v28  ;;  %v488_v34 = vmax.f32 %v469_v29, 0.0  ;;  %v384_v35 = vadd.f32 %v383_v33, %v271_v31  ;;  %v472_v36 = vpop.f32.mrb[6].mxu1  ;;  %v385_v37 = vpop.f32.mrb[7].mxu0  ;;  %515 = sbr.rel (!%p771_p5) target bundleno = 293 (0x125), region = 59  ;;  %v533_v47 = vld [vmem:[%s894_s29 + $0x8] sm:$0xff] (%p771_p5)  ;;  %532 = vst [vmem:[%s518_s20] sm:$0xff] (%p771_p5), %v531_v46 }
 0x117   : > { %503 = vst [vmem:[%s894_s29 + $0x50] sm:$0xff] %v487_v30  ;;  %502 = vst [vmem:[%s894_s29 + $0x48] sm:$0xff] %v486_v32  ;;  %v473_v38 = vadd.f32 %v472_v36, %v271_v31  ;;  %v386_v39 = vadd.f32 %v385_v37, %v271_v31  ;;  %v474_v40 = vpop.f32.mrb[7].mxu1  ;;  %v535_v48 = vld [vmem:[%s894_s29 + $0x10] sm:$0xff] (%p771_p5)  ;;  %v537_v49 = vld [vmem:[%s894_s29 + $0x18] sm:$0xff] (%p771_p5) }
 0x118   : > { %504 = vst [vmem:[%s894_s29 + $0x58] sm:$0xff] %v488_v34  ;;  %v489_v41 = vmax.f32 %v384_v35, 0.0  ;;  %v475_v42 = vadd.f32 %v474_v40, %v271_v31  ;;  %534 = vst [vmem:[%s518_s20 + $0x8] sm:$0xff] (%p771_p5), %v533_v47 }
 0x119   : > { %v491_v43 = vmax.f32 %v473_v38, 0.0  ;;  %v490_v44 = vmax.f32 %v386_v39, 0.0  ;;  %v539_v50 = vld [vmem:[%s894_s29 + $0x20] sm:$0xff] (%p771_p5)  ;;  %536 = vst [vmem:[%s518_s20 + $0x10] sm:$0xff] (%p771_p5), %v535_v48  ;;  %538 = vst [vmem:[%s518_s20 + $0x18] sm:$0xff] (%p771_p5), %v537_v49 }
 0x11a   : > { %505 = vst [vmem:[%s894_s29 + $0x60] sm:$0xff] %v489_v41  ;;  %v492_v45 = vmax.f32 %v475_v42, 0.0  ;;  %v541_v51 = vld [vmem:[%s894_s29 + $0x28] sm:$0xff] (%p771_p5)  ;;  %540 = vst [vmem:[%s518_s20 + $0x40] sm:$0xff] (%p771_p5), %v539_v50  ;;  %v543_v52 = vld [vmem:[%s894_s29 + $0x30] sm:$0xff] (%p771_p5) }
 0x11b   : > { %507 = vst [vmem:[%s894_s29 + $0x70] sm:$0xff] %v491_v43  ;;  %506 = vst [vmem:[%s894_s29 + $0x68] sm:$0xff] %v490_v44  ;;  %v545_v53 = vld [vmem:[%s894_s29 + $0x38] sm:$0xff] (%p771_p5) }
 0x11c   : > { %508 = vst [vmem:[%s894_s29 + $0x78] sm:$0xff] %v492_v45  ;;  %542 = vst [vmem:[%s518_s20 + $0x48] sm:$0xff] (%p771_p5), %v541_v51 }
 0x11d   : > { %v547_v54 = vld [vmem:[%s894_s29 + $0x40] sm:$0xff]  ;;  %544 = vst [vmem:[%s518_s20 + $0x50] sm:$0xff] %v543_v52  ;;  %546 = vst [vmem:[%s518_s20 + $0x58] sm:$0xff] %v545_v53 }
 0x11e   : > { %548 = vst [vmem:[%s518_s20 + $0x80] sm:$0xff] %v547_v54  ;;  %v549_v55 = vld [vmem:[%s894_s29 + $0x48] sm:$0xff]  ;;  %v551_v56 = vld [vmem:[%s894_s29 + $0x50] sm:$0xff] }
 0x11f   : > { %v553_v57 = vld [vmem:[%s894_s29 + $0x58] sm:$0xff]  ;;  %550 = vst [vmem:[%s518_s20 + $0x88] sm:$0xff] %v549_v55  ;;  %552 = vst [vmem:[%s518_s20 + $0x90] sm:$0xff] %v551_v56 }
 0x120   : > { %554 = vst [vmem:[%s518_s20 + $0x98] sm:$0xff] %v553_v57 }
 0x121   : > { %v555_v58 = vld [vmem:[%s894_s29 + $0x60] sm:$0xff] }
 0x122   : > { %v557_v59 = vld [vmem:[%s894_s29 + $0x68] sm:$0xff]  ;;  %v559_v60 = vld [vmem:[%s894_s29 + $0x70] sm:$0xff]  ;;  %556 = vst [vmem:[%s518_s20 + $0xc0] sm:$0xff] %v555_v58 }
 0x123   : > { %558 = vst [vmem:[%s518_s20 + $0xc8] sm:$0xff] %v557_v59  ;;  %560 = vst [vmem:[%s518_s20 + $0xd0] sm:$0xff] %v559_v60  ;;  %v561_v61 = vld [vmem:[%s894_s29 + $0x78] sm:$0xff] }
 0x124   : > { %562 = vst [vmem:[%s518_s20 + $0xd8] sm:$0xff] %v561_v61 }
 0x125 PF: > { %p10_p10 = scmp.ge.s32.totalorder %s758_s16, 4   ;;  %s950_s12 = smov %s713_s13 }
 0x126   : > { %s951_s13 = smov %s769_s19  ;;  %s952_s14 = smov %s758_s16 }
 0x127   :  { %12 = sbr.rel (!%p10_p10) target bundleno = 2 (0x2), region = 113 }

</bundles_post_ra>
